<compile_context>
chip_gen: v5e
topology: v5e:2x2
jax: 0.10.0
libtpu: 0.0.40
codegen_flags: <defaults>
</compile_context>

<pallas_src>
import jax
import jax.numpy as jnp
from jax.experimental import pallas as pl
from jax.experimental.pallas import tpu as pltpu

HIDDEN = 10


def _round_up(a, m):
    return ((a + m - 1) // m) * m


def mlp_kernel(x_ref, w1_ref, b1_ref, w2_ref, b2_ref, o_ref):
    # x_ref: (block_r, cols) batch slab in VMEM (sublane+lane dense).
    # w1_ref/b1_ref/w2_ref: (HIDDEN,) f32 in SMEM; b2_ref: (1,) f32 in SMEM.
    x = x_ref[...]                                   # (block_r, cols)
    acc = jnp.zeros_like(x) + b2_ref[0]              # start from fc2 bias
    for j in range(HIDDEN):                          # fully unrolled, scalar weights
        h = w1_ref[j] * x + b1_ref[j]                # VPU: scalar * vreg + scalar
        s = 0.5 * jnp.tanh(0.5 * h) + 0.5            # sigmoid via EUP tanh
        acc = acc + w2_ref[j] * s                    # VPU accumulate
    o_ref[...] = acc.astype(o_ref.dtype)


def mlp_forward(x, w1, b1, w2, b2, *, lane_width=1024, max_block_rows=512):
    """x: (N, 1); w1: (10, 1); b1: (10,); w2: (1, 10); b2: (1,).

    Returns (N, 1), matching the PyTorch module's forward.
    """
    n = x.shape[0]

    # --- Choose a sublane+lane-dense slab layout ---------------------------
    cols = lane_width if n >= lane_width else 128          # lane axis (mult of 128)
    rows = _round_up(max(1, pl.cdiv(n, cols)), 8)           # sublane axis (mult of 8)

    block_r = min(max_block_rows, rows)
    # Prefer >= 2 grid steps when there is enough data (v7x has 2 TensorCores).
    if rows >= 16 and rows // block_r < 2:
        block_r = _round_up(pl.cdiv(rows, 2), 8)
    rows_pad = _round_up(rows, block_r)
    n_pad = rows_pad * cols

    # Batch as a dense 2D slab; padded tail computes sigmoid(b1) garbage that
    # is sliced off below.
    x_slab = jnp.pad(x.reshape(-1), (0, n_pad - n)).reshape(rows_pad, cols)

    # Parameters as tiny 1D SMEM arrays, read as scalars inside the kernel.
    w1f = w1.reshape(-1).astype(jnp.float32)   # (10,)
    b1f = b1.reshape(-1).astype(jnp.float32)   # (10,)
    w2f = w2.reshape(-1).astype(jnp.float32)   # (10,)
    b2f = b2.reshape(-1).astype(jnp.float32)   # (1,)

    smem_spec = pl.BlockSpec(memory_space=pltpu.MemorySpace.SMEM)
    slab_spec = pl.BlockSpec((block_r, cols), lambda i: (i, 0))

    out = pl.pallas_call(
        mlp_kernel,
        out_shape=jax.ShapeDtypeStruct((rows_pad, cols), x.dtype),
        grid=(rows_pad // block_r,),
        in_specs=[slab_spec, smem_spec, smem_spec, smem_spec, smem_spec],
        out_specs=slab_spec,
        compiler_params=pltpu.CompilerParams(
            dimension_semantics=("parallel",)),
    )(x_slab, w1f, b1f, w2f, b2f)

    return out.reshape(-1)[:n].reshape(n, 1)


def _ref_forward(x, w1, b1, w2, b2):
    h = x @ w1.T + b1
    h = jax.nn.sigmoid(h)
    return h @ w2.T + b2


if __name__ == "__main__":
    key = jax.random.PRNGKey(0)
    kx, k1, k2, k3, k4 = jax.random.split(key, 5)

    w1 = jax.random.normal(k1, (HIDDEN, 1), dtype=jnp.float32) * 0.5
    b1 = jax.random.normal(k2, (HIDDEN,), dtype=jnp.float32) * 0.1
    w2 = jax.random.normal(k3, (1, HIDDEN), dtype=jnp.float32) * 0.5
    b2 = jax.random.normal(k4, (1,), dtype=jnp.float32) * 0.1

    # Small-shape check (matches the module's expected (N, 1) input).
    N_small = 8
    x_small = jax.random.normal(kx, (N_small, 1), dtype=jnp.float32)
    out_small = mlp_forward(x_small, w1, b1, w2, b2)
    jax.block_until_ready(out_small)
    ref_small = _ref_forward(x_small, w1, b1, w2, b2)
    assert out_small.shape == (N_small, 1)
    assert jnp.allclose(out_small, ref_small, atol=1e-5, rtol=1e-5)

    # Modest multi-block check (exercises padding + >1 grid step path).
    N_big = 5000
    x_big = jax.random.normal(kx, (N_big, 1), dtype=jnp.float32)
    out_big = mlp_forward(x_big, w1, b1, w2, b2)
    jax.block_until_ready(out_big)
    ref_big = _ref_forward(x_big, w1, b1, w2, b2)
    assert out_big.shape == (N_big, 1)
    assert jnp.allclose(out_big, ref_big, atol=1e-5, rtol=1e-5)

    print("KERNEL_OK")
</pallas_src>

<mosaic_0001>
module attributes {stable_mosaic.version = 11 : i64} {
  func.func @mlp_kernel(%arg0: i32, %arg1: memref<8x128xf32, #tpu.memory_space<vmem>>, %arg2: memref<10xf32, #tpu.memory_space<smem>>, %arg3: memref<10xf32, #tpu.memory_space<smem>>, %arg4: memref<10xf32, #tpu.memory_space<smem>>, %arg5: memref<1xf32, #tpu.memory_space<smem>>, %arg6: memref<8x128xf32, #tpu.memory_space<vmem>>) attributes {dimension_semantics = [#tpu.dimension_semantics<parallel>], iteration_bounds = array<i64: 1>, scalar_prefetch = 0 : i64, scratch_operands = 0 : i64, tpu.core_type = #tpu.core_type<tc>, window_params = [{transform_indices = @transform_0, window_bounds = array<i64: 8, 128>}, {transform_indices = @transform_1, window_bounds = array<i64: 10>}, {transform_indices = @transform_2, window_bounds = array<i64: 10>}, {transform_indices = @transform_3, window_bounds = array<i64: 10>}, {transform_indices = @transform_4, window_bounds = array<i64: 1>}, {transform_indices = @transform_5, window_bounds = array<i64: 8, 128>}]} {
    %c0 = arith.constant 0 : index
    %c0_0 = arith.constant 0 : index
    %0 = vector.load %arg1[%c0, %c0_0] : memref<8x128xf32, #tpu.memory_space<vmem>>, vector<8x128xf32>
    %cst = arith.constant 0.000000e+00 : f32
    %1 = vector.broadcast %cst : f32 to vector<8x128xf32>
    %c0_1 = arith.constant 0 : index
    %2 = memref.load %arg5[%c0_1] : memref<1xf32, #tpu.memory_space<smem>>
    %3 = vector.broadcast %2 : f32 to vector<8x128xf32>
    %4 = arith.addf %1, %3 : vector<8x128xf32>
    %c0_2 = arith.constant 0 : index
    %5 = memref.load %arg2[%c0_2] : memref<10xf32, #tpu.memory_space<smem>>
    %6 = vector.broadcast %5 : f32 to vector<8x128xf32>
    %7 = arith.mulf %6, %0 : vector<8x128xf32>
    %c0_3 = arith.constant 0 : index
    %8 = memref.load %arg3[%c0_3] : memref<10xf32, #tpu.memory_space<smem>>
    %9 = vector.broadcast %8 : f32 to vector<8x128xf32>
    %10 = arith.addf %7, %9 : vector<8x128xf32>
    %cst_4 = arith.constant 5.000000e-01 : f32
    %11 = vector.broadcast %cst_4 : f32 to vector<8x128xf32>
    %12 = arith.mulf %11, %10 : vector<8x128xf32>
    %13 = math.tanh %12 : vector<8x128xf32>
    %cst_5 = arith.constant 5.000000e-01 : f32
    %14 = vector.broadcast %cst_5 : f32 to vector<8x128xf32>
    %15 = arith.mulf %14, %13 : vector<8x128xf32>
    %cst_6 = arith.constant 5.000000e-01 : f32
    %16 = vector.broadcast %cst_6 : f32 to vector<8x128xf32>
    %17 = arith.addf %15, %16 : vector<8x128xf32>
    %c0_7 = arith.constant 0 : index
    %18 = memref.load %arg4[%c0_7] : memref<10xf32, #tpu.memory_space<smem>>
    %19 = vector.broadcast %18 : f32 to vector<8x128xf32>
    %20 = arith.mulf %19, %17 : vector<8x128xf32>
    %21 = arith.addf %4, %20 : vector<8x128xf32>
    %c1 = arith.constant 1 : index
    %22 = memref.load %arg2[%c1] : memref<10xf32, #tpu.memory_space<smem>>
    %23 = vector.broadcast %22 : f32 to vector<8x128xf32>
    %24 = arith.mulf %23, %0 : vector<8x128xf32>
    %c1_8 = arith.constant 1 : index
    %25 = memref.load %arg3[%c1_8] : memref<10xf32, #tpu.memory_space<smem>>
    %26 = vector.broadcast %25 : f32 to vector<8x128xf32>
    %27 = arith.addf %24, %26 : vector<8x128xf32>
    %cst_9 = arith.constant 5.000000e-01 : f32
    %28 = vector.broadcast %cst_9 : f32 to vector<8x128xf32>
    %29 = arith.mulf %28, %27 : vector<8x128xf32>
    %30 = math.tanh %29 : vector<8x128xf32>
    %cst_10 = arith.constant 5.000000e-01 : f32
    %31 = vector.broadcast %cst_10 : f32 to vector<8x128xf32>
    %32 = arith.mulf %31, %30 : vector<8x128xf32>
    %cst_11 = arith.constant 5.000000e-01 : f32
    %33 = vector.broadcast %cst_11 : f32 to vector<8x128xf32>
    %34 = arith.addf %32, %33 : vector<8x128xf32>
    %c1_12 = arith.constant 1 : index
    %35 = memref.load %arg4[%c1_12] : memref<10xf32, #tpu.memory_space<smem>>
    %36 = vector.broadcast %35 : f32 to vector<8x128xf32>
    %37 = arith.mulf %36, %34 : vector<8x128xf32>
    %38 = arith.addf %21, %37 : vector<8x128xf32>
    %c2 = arith.constant 2 : index
    %39 = memref.load %arg2[%c2] : memref<10xf32, #tpu.memory_space<smem>>
    %40 = vector.broadcast %39 : f32 to vector<8x128xf32>
    %41 = arith.mulf %40, %0 : vector<8x128xf32>
    %c2_13 = arith.constant 2 : index
    %42 = memref.load %arg3[%c2_13] : memref<10xf32, #tpu.memory_space<smem>>
    %43 = vector.broadcast %42 : f32 to vector<8x128xf32>
    %44 = arith.addf %41, %43 : vector<8x128xf32>
    %cst_14 = arith.constant 5.000000e-01 : f32
    %45 = vector.broadcast %cst_14 : f32 to vector<8x128xf32>
    %46 = arith.mulf %45, %44 : vector<8x128xf32>
    %47 = math.tanh %46 : vector<8x128xf32>
    %cst_15 = arith.constant 5.000000e-01 : f32
    %48 = vector.broadcast %cst_15 : f32 to vector<8x128xf32>
    %49 = arith.mulf %48, %47 : vector<8x128xf32>
    %cst_16 = arith.constant 5.000000e-01 : f32
    %50 = vector.broadcast %cst_16 : f32 to vector<8x128xf32>
    %51 = arith.addf %49, %50 : vector<8x128xf32>
    %c2_17 = arith.constant 2 : index
    %52 = memref.load %arg4[%c2_17] : memref<10xf32, #tpu.memory_space<smem>>
    %53 = vector.broadcast %52 : f32 to vector<8x128xf32>
    %54 = arith.mulf %53, %51 : vector<8x128xf32>
    %55 = arith.addf %38, %54 : vector<8x128xf32>
    %c3 = arith.constant 3 : index
    %56 = memref.load %arg2[%c3] : memref<10xf32, #tpu.memory_space<smem>>
    %57 = vector.broadcast %56 : f32 to vector<8x128xf32>
    %58 = arith.mulf %57, %0 : vector<8x128xf32>
    %c3_18 = arith.constant 3 : index
    %59 = memref.load %arg3[%c3_18] : memref<10xf32, #tpu.memory_space<smem>>
    %60 = vector.broadcast %59 : f32 to vector<8x128xf32>
    %61 = arith.addf %58, %60 : vector<8x128xf32>
    %cst_19 = arith.constant 5.000000e-01 : f32
    %62 = vector.broadcast %cst_19 : f32 to vector<8x128xf32>
    %63 = arith.mulf %62, %61 : vector<8x128xf32>
    %64 = math.tanh %63 : vector<8x128xf32>
    %cst_20 = arith.constant 5.000000e-01 : f32
    %65 = vector.broadcast %cst_20 : f32 to vector<8x128xf32>
    %66 = arith.mulf %65, %64 : vector<8x128xf32>
    %cst_21 = arith.constant 5.000000e-01 : f32
    %67 = vector.broadcast %cst_21 : f32 to vector<8x128xf32>
    %68 = arith.addf %66, %67 : vector<8x128xf32>
    %c3_22 = arith.constant 3 : index
    %69 = memref.load %arg4[%c3_22] : memref<10xf32, #tpu.memory_space<smem>>
    %70 = vector.broadcast %69 : f32 to vector<8x128xf32>
    %71 = arith.mulf %70, %68 : vector<8x128xf32>
    %72 = arith.addf %55, %71 : vector<8x128xf32>
    %c4 = arith.constant 4 : index
    %73 = memref.load %arg2[%c4] : memref<10xf32, #tpu.memory_space<smem>>
    %74 = vector.broadcast %73 : f32 to vector<8x128xf32>
    %75 = arith.mulf %74, %0 : vector<8x128xf32>
    %c4_23 = arith.constant 4 : index
    %76 = memref.load %arg3[%c4_23] : memref<10xf32, #tpu.memory_space<smem>>
    %77 = vector.broadcast %76 : f32 to vector<8x128xf32>
    %78 = arith.addf %75, %77 : vector<8x128xf32>
    %cst_24 = arith.constant 5.000000e-01 : f32
    %79 = vector.broadcast %cst_24 : f32 to vector<8x128xf32>
    %80 = arith.mulf %79, %78 : vector<8x128xf32>
    %81 = math.tanh %80 : vector<8x128xf32>
    %cst_25 = arith.constant 5.000000e-01 : f32
    %82 = vector.broadcast %cst_25 : f32 to vector<8x128xf32>
    %83 = arith.mulf %82, %81 : vector<8x128xf32>
    %cst_26 = arith.constant 5.000000e-01 : f32
    %84 = vector.broadcast %cst_26 : f32 to vector<8x128xf32>
    %85 = arith.addf %83, %84 : vector<8x128xf32>
    %c4_27 = arith.constant 4 : index
    %86 = memref.load %arg4[%c4_27] : memref<10xf32, #tpu.memory_space<smem>>
    %87 = vector.broadcast %86 : f32 to vector<8x128xf32>
    %88 = arith.mulf %87, %85 : vector<8x128xf32>
    %89 = arith.addf %72, %88 : vector<8x128xf32>
    %c5 = arith.constant 5 : index
    %90 = memref.load %arg2[%c5] : memref<10xf32, #tpu.memory_space<smem>>
    %91 = vector.broadcast %90 : f32 to vector<8x128xf32>
    %92 = arith.mulf %91, %0 : vector<8x128xf32>
    %c5_28 = arith.constant 5 : index
    %93 = memref.load %arg3[%c5_28] : memref<10xf32, #tpu.memory_space<smem>>
    %94 = vector.broadcast %93 : f32 to vector<8x128xf32>
    %95 = arith.addf %92, %94 : vector<8x128xf32>
    %cst_29 = arith.constant 5.000000e-01 : f32
    %96 = vector.broadcast %cst_29 : f32 to vector<8x128xf32>
    %97 = arith.mulf %96, %95 : vector<8x128xf32>
    %98 = math.tanh %97 : vector<8x128xf32>
    %cst_30 = arith.constant 5.000000e-01 : f32
    %99 = vector.broadcast %cst_30 : f32 to vector<8x128xf32>
    %100 = arith.mulf %99, %98 : vector<8x128xf32>
    %cst_31 = arith.constant 5.000000e-01 : f32
    %101 = vector.broadcast %cst_31 : f32 to vector<8x128xf32>
    %102 = arith.addf %100, %101 : vector<8x128xf32>
    %c5_32 = arith.constant 5 : index
    %103 = memref.load %arg4[%c5_32] : memref<10xf32, #tpu.memory_space<smem>>
    %104 = vector.broadcast %103 : f32 to vector<8x128xf32>
    %105 = arith.mulf %104, %102 : vector<8x128xf32>
    %106 = arith.addf %89, %105 : vector<8x128xf32>
    %c6 = arith.constant 6 : index
    %107 = memref.load %arg2[%c6] : memref<10xf32, #tpu.memory_space<smem>>
    %108 = vector.broadcast %107 : f32 to vector<8x128xf32>
    %109 = arith.mulf %108, %0 : vector<8x128xf32>
    %c6_33 = arith.constant 6 : index
    %110 = memref.load %arg3[%c6_33] : memref<10xf32, #tpu.memory_space<smem>>
    %111 = vector.broadcast %110 : f32 to vector<8x128xf32>
    %112 = arith.addf %109, %111 : vector<8x128xf32>
    %cst_34 = arith.constant 5.000000e-01 : f32
    %113 = vector.broadcast %cst_34 : f32 to vector<8x128xf32>
    %114 = arith.mulf %113, %112 : vector<8x128xf32>
    %115 = math.tanh %114 : vector<8x128xf32>
    %cst_35 = arith.constant 5.000000e-01 : f32
    %116 = vector.broadcast %cst_35 : f32 to vector<8x128xf32>
    %117 = arith.mulf %116, %115 : vector<8x128xf32>
    %cst_36 = arith.constant 5.000000e-01 : f32
    %118 = vector.broadcast %cst_36 : f32 to vector<8x128xf32>
    %119 = arith.addf %117, %118 : vector<8x128xf32>
    %c6_37 = arith.constant 6 : index
    %120 = memref.load %arg4[%c6_37] : memref<10xf32, #tpu.memory_space<smem>>
    %121 = vector.broadcast %120 : f32 to vector<8x128xf32>
    %122 = arith.mulf %121, %119 : vector<8x128xf32>
    %123 = arith.addf %106, %122 : vector<8x128xf32>
    %c7 = arith.constant 7 : index
    %124 = memref.load %arg2[%c7] : memref<10xf32, #tpu.memory_space<smem>>
    %125 = vector.broadcast %124 : f32 to vector<8x128xf32>
    %126 = arith.mulf %125, %0 : vector<8x128xf32>
    %c7_38 = arith.constant 7 : index
    %127 = memref.load %arg3[%c7_38] : memref<10xf32, #tpu.memory_space<smem>>
    %128 = vector.broadcast %127 : f32 to vector<8x128xf32>
    %129 = arith.addf %126, %128 : vector<8x128xf32>
    %cst_39 = arith.constant 5.000000e-01 : f32
    %130 = vector.broadcast %cst_39 : f32 to vector<8x128xf32>
    %131 = arith.mulf %130, %129 : vector<8x128xf32>
    %132 = math.tanh %131 : vector<8x128xf32>
    %cst_40 = arith.constant 5.000000e-01 : f32
    %133 = vector.broadcast %cst_40 : f32 to vector<8x128xf32>
    %134 = arith.mulf %133, %132 : vector<8x128xf32>
    %cst_41 = arith.constant 5.000000e-01 : f32
    %135 = vector.broadcast %cst_41 : f32 to vector<8x128xf32>
    %136 = arith.addf %134, %135 : vector<8x128xf32>
    %c7_42 = arith.constant 7 : index
    %137 = memref.load %arg4[%c7_42] : memref<10xf32, #tpu.memory_space<smem>>
    %138 = vector.broadcast %137 : f32 to vector<8x128xf32>
    %139 = arith.mulf %138, %136 : vector<8x128xf32>
    %140 = arith.addf %123, %139 : vector<8x128xf32>
    %c8 = arith.constant 8 : index
    %141 = memref.load %arg2[%c8] : memref<10xf32, #tpu.memory_space<smem>>
    %142 = vector.broadcast %141 : f32 to vector<8x128xf32>
    %143 = arith.mulf %142, %0 : vector<8x128xf32>
    %c8_43 = arith.constant 8 : index
    %144 = memref.load %arg3[%c8_43] : memref<10xf32, #tpu.memory_space<smem>>
    %145 = vector.broadcast %144 : f32 to vector<8x128xf32>
    %146 = arith.addf %143, %145 : vector<8x128xf32>
    %cst_44 = arith.constant 5.000000e-01 : f32
    %147 = vector.broadcast %cst_44 : f32 to vector<8x128xf32>
    %148 = arith.mulf %147, %146 : vector<8x128xf32>
    %149 = math.tanh %148 : vector<8x128xf32>
    %cst_45 = arith.constant 5.000000e-01 : f32
    %150 = vector.broadcast %cst_45 : f32 to vector<8x128xf32>
    %151 = arith.mulf %150, %149 : vector<8x128xf32>
    %cst_46 = arith.constant 5.000000e-01 : f32
    %152 = vector.broadcast %cst_46 : f32 to vector<8x128xf32>
    %153 = arith.addf %151, %152 : vector<8x128xf32>
    %c8_47 = arith.constant 8 : index
    %154 = memref.load %arg4[%c8_47] : memref<10xf32, #tpu.memory_space<smem>>
    %155 = vector.broadcast %154 : f32 to vector<8x128xf32>
    %156 = arith.mulf %155, %153 : vector<8x128xf32>
    %157 = arith.addf %140, %156 : vector<8x128xf32>
    %c9 = arith.constant 9 : index
    %158 = memref.load %arg2[%c9] : memref<10xf32, #tpu.memory_space<smem>>
    %159 = vector.broadcast %158 : f32 to vector<8x128xf32>
    %160 = arith.mulf %159, %0 : vector<8x128xf32>
    %c9_48 = arith.constant 9 : index
    %161 = memref.load %arg3[%c9_48] : memref<10xf32, #tpu.memory_space<smem>>
    %162 = vector.broadcast %161 : f32 to vector<8x128xf32>
    %163 = arith.addf %160, %162 : vector<8x128xf32>
    %cst_49 = arith.constant 5.000000e-01 : f32
    %164 = vector.broadcast %cst_49 : f32 to vector<8x128xf32>
    %165 = arith.mulf %164, %163 : vector<8x128xf32>
    %166 = math.tanh %165 : vector<8x128xf32>
    %cst_50 = arith.constant 5.000000e-01 : f32
    %167 = vector.broadcast %cst_50 : f32 to vector<8x128xf32>
    %168 = arith.mulf %167, %166 : vector<8x128xf32>
    %cst_51 = arith.constant 5.000000e-01 : f32
    %169 = vector.broadcast %cst_51 : f32 to vector<8x128xf32>
    %170 = arith.addf %168, %169 : vector<8x128xf32>
    %c9_52 = arith.constant 9 : index
    %171 = memref.load %arg4[%c9_52] : memref<10xf32, #tpu.memory_space<smem>>
    %172 = vector.broadcast %171 : f32 to vector<8x128xf32>
    %173 = arith.mulf %172, %170 : vector<8x128xf32>
    %174 = arith.addf %157, %173 : vector<8x128xf32>
    %c0_53 = arith.constant 0 : index
    %c0_54 = arith.constant 0 : index
    %175 = vector.load %arg6[%c0_53, %c0_54] : memref<8x128xf32, #tpu.memory_space<vmem>>, vector<8x128xf32>
    tpu.vector_store %arg6[%c0_53, %c0_54], %174 {strides = array<i32>} : memref<8x128xf32, #tpu.memory_space<vmem>>, vector<8x128xf32>,
    return
  }
  func.func @transform_0(%arg0: i32) -> (i32, i32) {
    %c0_i32 = arith.constant 0 : i32
    %c0_i32_0 = arith.constant 0 : i32
    return %arg0, %c0_i32 : i32, i32
  }
  func.func @transform_1(%arg0: i32) -> i32 {
    %c0_i32 = arith.constant 0 : i32
    %c0_i32_0 = arith.constant 0 : i32
    return %c0_i32 : i32
  }
  func.func @transform_2(%arg0: i32) -> i32 {
    %c0_i32 = arith.constant 0 : i32
    %c0_i32_0 = arith.constant 0 : i32
    return %c0_i32 : i32
  }
  func.func @transform_3(%arg0: i32) -> i32 {
    %c0_i32 = arith.constant 0 : i32
    %c0_i32_0 = arith.constant 0 : i32
    return %c0_i32 : i32
  }
  func.func @transform_4(%arg0: i32) -> i32 {
    %c0_i32 = arith.constant 0 : i32
    %c0_i32_0 = arith.constant 0 : i32
    return %c0_i32 : i32
  }
  func.func @transform_5(%arg0: i32) -> (i32, i32) {
    %c0_i32 = arith.constant 0 : i32
    %c0_i32_0 = arith.constant 0 : i32
    return %arg0, %c0_i32 : i32, i32
  }
}

</mosaic_0001>

<bundles_post_ra>
// kernel: tpu_custom_call.1
= control target key start
LH: loop header
LB: loop body
LE: loop exit
PB: predicated region body
PF: predicated region fallthrough
CT: control target
= control target key end

     0   :  { %11 = vsyncpa [#allocation4], 0  ;;  %s493_s0 = inlined_call_operand.hbm [shape: f32[8,128], index: 0, kind: input, shape index: {}]   ;;  %s494_s1 = inlined_call_operand.vmem [shape: f32[10], index: 1, kind: input, shape index: {}]   ;;  %s495_s2 = inlined_call_operand.vmem [shape: f32[10], index: 2, kind: input, shape index: {}]   ;;  %s496_s3 = inlined_call_operand.vmem [shape: f32[10], index: 3, kind: input, shape index: {}]   ;;  %s497_s4 = inlined_call_operand.<no memory space> [shape: f32[1], index: 4, kind: input, shape index: {}]   ;;  %s498_s5 = inlined_call_operand.hbm [shape: f32[8,128], index: 5, kind: output, shape index: {}]  }
   0x1   :  { %12 = vsyncpa [#allocation6], 0 }
   0x2   :  { %13 = vsyncpa [#allocation9], 0  ;;  %s40_s20 = sshll.u32 %s495_s2, 4  ;;  %s41_s20 = int_to_ptr.vmem [resolvable:$true] %s40_s20 }
   0x3   :  { %14 = vsyncpa [#allocation5], 0  ;;  %s20_s23 = sshll.u32 %s493_s0, 4  ;;  %s380_s24 = smov [#allocation8]   ;;  %s21_s23 = int_to_ptr.hbm [resolvable:$true] %s20_s23 }
   0x4   :  { %43 = dma.vmem_to_smem %s41_s20, 16, %s380_s24, [#allocation9]  }
   0x5   :  { %s381_s25 = smov [#allocation3]   ;;  %s31_s29 = sshll.u32 %s494_s1, 4  ;;  %s32_s29 = int_to_ptr.vmem [resolvable:$true] %s31_s29 }
   0x6   :  { %s22_s26 = sshll.u32 %s381_s25, 4  ;;  %s49_s6 = sshll.u32 %s496_s3, 4  ;;  %s23_s26 = int_to_ptr.vmem [resolvable:$true] %s22_s26  ;;  %s50_s6 = int_to_ptr.vmem [resolvable:$true] %s49_s6 }
   0x7   :  { %25 = dma.hbm_to_vmem [thread:$0]  %s21_s23, 128, %s23_s26, [#allocation4]  }
   0x8   :  { %s382_s7 = smov [#allocation7]   ;;  %s383_s0 = smov [#allocation10]  }
   0x9   :  { %34 = dma.vmem_to_smem %s32_s29, 16, %s382_s7, [#allocation6]  }
   0xa   :  { %52 = dma.vmem_to_smem %s50_s6, 16, %s383_s0, [#allocation9]  }
   0xb   :  { %372 = dma.done.wait [#allocation4], 128  }
   0xc   :  { %373 = vsyncadd [#allocation4], 4294967168 }
   0xd   :  { %374 = dma.done.wait [#allocation6], 16  }
   0xe   :  { %375 = vsyncadd [#allocation6], 4294967280 }
   0xf   :  { %376 = dma.done.wait [#allocation9], 32  }
  0x10   :  { %377 = vsyncadd [#allocation9], 4294967264 }
  0x11   :  { %71 = sfence }
  0x12   :  { %s76_s1 = sld [smem:[#allocation7]]  ;;  %v427_v0 = vld [vmem:[#allocation3] sm:$0xff]  ;;  %v74_v33 = vstv %s497_s4 }
  0x13   :  { %s79_s8 = sld [smem:[#allocation8]] }
  0x14   :  { %s236_s9 = sld [smem:[#allocation7 + $0x1]] }
  0x15   :  { %s237_s10 = sld [smem:[#allocation8 + $0x1]] }
  0x16   :  { %s239_s3 = sld [smem:[#allocation7 + $0x2]] }
  0x17   :  { %s240_s11 = sld [smem:[#allocation8 + $0x2]] }
  0x18   :  { %v77_v1 = vstv %s76_s1  ;;  %s242_s12 = sld [smem:[#allocation7 + $0x3]] }
  0x19   :  { %v78_v2 = vmul.f32 %v77_v1, %v427_v0  ;;  %v80_v3 = vstv %s79_s8  ;;  %s243_s13 = sld [smem:[#allocation8 + $0x3]] }
  0x1a   :  { %v91_v5 = vstv %s236_s9  ;;  %s431_s14 = sld [smem:[#allocation10]]  ;;  %s384_s9 = smov [#allocation11]  }
  0x1b   :  { %v81_v4 = vadd.f32 %v80_v3, %v78_v2  ;;  %v92_v6 = vmul.f32 %v91_v5, %v427_v0  ;;  %v94_v7 = vstv %s237_s10  ;;  %s245_s15 = sld [smem:[#allocation7 + $0x4]]  ;;  %s222_s10 = sshll.u32 %s384_s9, 4  ;;  %s223_s10 = int_to_ptr.vmem [resolvable:$true] %s222_s10 }
  0x1c   :  { %v105_v10 = vstv %s239_s3  ;;  %s246_s16 = sld [smem:[#allocation8 + $0x4]] }
  0x1d   :  { %v82_v8 = vmul.f32 0.5, %v81_v4  ;;  %v95_v9 = vadd.f32 %v94_v7, %v92_v6  ;;  %v106_v11 = vmul.f32 %v105_v10, %v427_v0  ;;  %v108_v12 = vstv %s240_s11  ;;  %s434_s17 = sld [smem:[#allocation10 + $0x1]] }
  0x1e   :  { %v119_v15 = vstv %s242_s12  ;;  %s248_s18 = sld [smem:[#allocation7 + $0x5]]  ;;  %s224_s12 = sshll.u32 %s498_s5, 4  ;;  %s225_s12 = int_to_ptr.hbm [resolvable:$true] %s224_s12 }
  0x1f   :  { %268 = vtanh.f32 %v82_v8  ;;  %v96_v13 = vmul.f32 0.5, %v95_v9  ;;  %v109_v14 = vadd.f32 %v108_v12, %v106_v11  ;;  %v120_v16 = vmul.f32 %v119_v15, %v427_v0  ;;  %s437_s19 = sld [smem:[#allocation8 + $0x5]] }
  0x20   :  { %v122_v17 = vstv %s243_s13  ;;  %s439_s20 = sld [smem:[#allocation10 + $0x2]]  ;;  %v87_v26 = vstv %s431_s14 }
  0x21   :  { %270 = vtanh.f32 %v96_v13  ;;  %v110_v18 = vmul.f32 0.5, %v109_v14  ;;  %v123_v19 = vadd.f32 %v122_v17, %v120_v16  ;;  %v133_v20 = vstv %s245_s15  ;;  %s441_s21 = sld [smem:[#allocation7 + $0x6]] }
  0x22   :  { %v134_v22 = vmul.f32 %v133_v20, %v427_v0  ;;  %v136_v23 = vstv %s246_s16  ;;  %s444_s22 = sld [smem:[#allocation8 + $0x6]] }
  0x23   :  { %272 = vtanh.f32 %v110_v18  ;;  %v124_v25 = vmul.f32 0.5, %v123_v19  ;;  %s446_s23 = sld [smem:[#allocation10 + $0x3]]  ;;  %v101_v37 = vstv %s434_s17 }
  0x24   :  { %v137_v27 = vadd.f32 %v136_v23, %v134_v22  ;;  %v147_v28 = vstv %s248_s18  ;;  %s449_s24 = sld [smem:[#allocation7 + $0x7]] }
  0x25   :  { %v269_v21 = vpop.eup %268  ;;  %274 = vtanh.f32 %v124_v25  ;;  %v148_v31 = vmul.f32 %v147_v28, %v427_v0  ;;  %v150_v32 = vstv %s437_s19  ;;  %s453_s25 = sld [smem:[#allocation8 + $0x7]] }
  0x26   :  { %v84_v24 = vmul.f32 0.5, %v269_v21  ;;  %v138_v35 = vmul.f32 0.5, %v137_v27  ;;  %s458_s28 = sld [smem:[#allocation10 + $0x4]]  ;;  %v115_v48 = vstv %s439_s20 }
  0x27   :  { %v271_v29 = vpop.eup %270  ;;  %v151_v38 = vadd.f32 %v150_v32, %v148_v31  ;;  %v161_v39 = vstv %s441_s21  ;;  %s462_s29 = sld [smem:[#allocation7 + $0x8]] }
  0x28   :  { %v85_v30 = vadd.f32 0.5, %v84_v24  ;;  %v98_v34 = vmul.f32 0.5, %v271_v29  ;;  %276 = vtanh.f32 %v138_v35  ;;  %v162_v42 = vmul.f32 %v161_v39, %v427_v0  ;;  %s466_s4 = sld [smem:[#allocation8 + $0x8]] }
  0x29   :  { %v273_v40 = vpop.eup %272  ;;  %v164_v43 = vstv %s444_s22  ;;  %v152_v46 = vmul.f32 0.5, %v151_v38  ;;  %s468_s30 = sld [smem:[#allocation10 + $0x5]]  ;;  %v129_v59 = vstv %s446_s23 }
  0x2a   :  { %v88_v36 = vmul.f32 %v87_v26, %v85_v30  ;;  %v99_v41 = vadd.f32 0.5, %v98_v34  ;;  %v112_v45 = vmul.f32 0.5, %v273_v40  ;;  %v165_v49 = vadd.f32 %v164_v43, %v162_v42  ;;  %s472_s2 = sld [smem:[#allocation7 + $0x9]] }
  0x2b   :  { %v175_v50 = vstv %s449_s24  ;;  %v275_v51 = vpop.eup %274  ;;  %278 = vtanh.f32 %v152_v46  ;;  %v178_v54 = vstv %s453_s25  ;;  %s476_s6 = sld [smem:[#allocation8 + $0x9]] }
  0x2c   :  { %v89_v44 = vadd.f32 %v88_v36, %v74_v33  ;;  %v102_v47 = vmul.f32 %v101_v37, %v99_v41  ;;  %v113_v52 = vadd.f32 0.5, %v112_v45  ;;  %v176_v53 = vmul.f32 %v175_v50, %v427_v0  ;;  %s480_s7 = sld [smem:[#allocation10 + $0x6]] }
  0x2d   :  { %v126_v56 = vmul.f32 0.5, %v275_v51  ;;  %v166_v57 = vmul.f32 0.5, %v165_v49  ;;  %v189_v61 = vstv %s462_s29  ;;  %v143_v7 = vstv %s458_s28  ;;  %s256_s0 = sld [smem:[#allocation10 + $0x7]] }
  0x2e   :  { %v103_v55 = vadd.f32 %v102_v47, %v89_v44  ;;  %v116_v58 = vmul.f32 %v115_v48, %v113_v52  ;;  %v179_v60 = vadd.f32 %v178_v54, %v176_v53  ;;  %v277_v62 = vpop.eup %276  ;;  %v190_v1 = vmul.f32 %v189_v61, %v427_v0  ;;  %s259_s1 = sld [smem:[#allocation10 + $0x8]] }
  0x2f   :  { %v127_v63 = vadd.f32 0.5, %v126_v56  ;;  %280 = vtanh.f32 %v166_v57  ;;  %v192_v2 = vstv %s466_s4  ;;  %v140_v4 = vmul.f32 0.5, %v277_v62  ;;  %s262_s8 = sld [smem:[#allocation10 + $0x9]] }
  0x30   :  { %v117_v3 = vadd.f32 %v116_v58, %v103_v55  ;;  %v180_v5 = vmul.f32 0.5, %v179_v60  ;;  %v193_v8 = vadd.f32 %v192_v2, %v190_v1  ;;  %v203_v9 = vstv %s472_s2 }
  0x31   :  { %v130_v6 = vmul.f32 %v129_v59, %v127_v63  ;;  %v279_v10 = vpop.eup %278  ;;  %v141_v11 = vadd.f32 0.5, %v140_v4  ;;  %v204_v12 = vmul.f32 %v203_v9, %v427_v0  ;;  %v206_v13 = vstv %s476_s6 }
  0x32   :  { %282 = vtanh.f32 %v180_v5  ;;  %v154_v15 = vmul.f32 0.5, %v279_v10  ;;  %v194_v16 = vmul.f32 0.5, %v193_v8  ;;  %v157_v18 = vstv %s468_s30 }
  0x33   :  { %v131_v14 = vadd.f32 %v130_v6, %v117_v3  ;;  %v144_v17 = vmul.f32 %v143_v7, %v141_v11  ;;  %v207_v19 = vadd.f32 %v206_v13, %v204_v12  ;;  %v171_v26 = vstv %s480_s7 }
  0x34   :  { %v155_v21 = vadd.f32 0.5, %v154_v15  ;;  %284 = vtanh.f32 %v194_v16  ;;  %v185_v31 = vstv %s256_s0  ;;  %v199_v37 = vstv %s259_s1 }
  0x35   :  { %v281_v20 = vpop.eup %280  ;;  %v145_v22 = vadd.f32 %v144_v17, %v131_v14  ;;  %v208_v24 = vmul.f32 0.5, %v207_v19  ;;  %v213_v43 = vstv %s262_s8 }
  0x36   :  { %v168_v23 = vmul.f32 0.5, %v281_v20  ;;  %v158_v25 = vmul.f32 %v157_v18, %v155_v21 }
  0x37   :  { %286 = vtanh.f32 %v208_v24 }
  0x38   :  { %v283_v27 = vpop.eup %282  ;;  %v169_v28 = vadd.f32 0.5, %v168_v23  ;;  %v159_v0 = vadd.f32 %v158_v25, %v145_v22 }
  0x39   :  { %v182_v29 = vmul.f32 0.5, %v283_v27 }
  0x3a   :  { %v172_v30 = vmul.f32 %v171_v26, %v169_v28  ;;  %v285_v32 = vpop.eup %284 }
  0x3b   :  { %v183_v33 = vadd.f32 0.5, %v182_v29  ;;  %v196_v35 = vmul.f32 0.5, %v285_v32 }
  0x3c   :  { %v173_v34 = vadd.f32 %v172_v30, %v159_v0 }
  0x3d   :  { %v186_v36 = vmul.f32 %v185_v31, %v183_v33  ;;  %v287_v38 = vpop.eup %286  ;;  %v197_v39 = vadd.f32 0.5, %v196_v35 }
  0x3e   :  { %v210_v41 = vmul.f32 0.5, %v287_v38 }
  0x3f   :  { %v187_v40 = vadd.f32 %v186_v36, %v173_v34  ;;  %v200_v42 = vmul.f32 %v199_v37, %v197_v39 }
  0x40   :  { %v211_v44 = vadd.f32 0.5, %v210_v41 }
  0x41   :  { %v201_v45 = vadd.f32 %v200_v42, %v187_v40 }
  0x42   :  { %v214_v46 = vmul.f32 %v213_v43, %v211_v44 }
  0x44   :  { %v215_v47 = vadd.f32 %v214_v46, %v201_v45 }
  0x46   :  { %216 = vst [vmem:[#allocation11] sm:$0xff] %v215_v47 }
  0x47   :  { %227 = dma.vmem_to_hbm [thread:$0]  %s223_s10, 128, %s225_s12, [#allocation5]  }
  0x48   :  { %378 = dma.done.wait [#allocation5], 128  }
  0x49   :  { %379 = vsyncadd [#allocation5], 4294967168 }
  0x4a   :  { %232 = vsyncpa [#allocation4], 1 }
  0x4b   :  { %233 = vsyncpa [#allocation5], 1 }
  0x4c   :  { %234 = vsyncpa [#allocation6], 1 }
  0x4d   :  { %235 = vsyncpa [#allocation9], 1 }

</bundles_post_ra>
